<compile_context>
chip_gen: v7x
topology: tpu7x:2x2x1
jax: 0.10.0
libtpu: 0.0.40
codegen_flags: <defaults>
</compile_context>

<pallas_src>
import functools

import jax
import jax.numpy as jnp
from jax.experimental import pallas as pl
from jax.experimental.pallas import tpu as pltpu

_LANE_ALIGN = 256  # full MXU tile on v6e/v7x; harmless zero-padding on v5e.


def _round_up(x, m):
    return ((x + m - 1) // m) * m


def _gelu_exact_f32(x):
    # PyTorch nn.GELU() default is the exact erf-based formulation; math in f32.
    return 0.5 * x * (1.0 + jax.lax.erf(x * 0.7071067811865476))


def _vmem_budget_bytes():
    """Per-generation VMEM budget, leaving headroom for compiler scratch."""
    phys = 64 << 20  # conservative default (v7x)
    try:
        info = pltpu.get_tpu_info()
        phys = int(getattr(info, "vmem_capacity_bytes", phys))
    except Exception:
        pass
    if phys >= (128 << 20):          # v5e / v6e
        return 100 << 20
    return max(phys - (8 << 20), 32 << 20)   # v7x: ~56 MiB


# --------------------------------------------------------------------------
# Kernels
# --------------------------------------------------------------------------
def _mlp_resident_kernel(x_ref, w1_ref, b1_ref, w2_ref, b2_ref, o_ref):
    # Weights are VMEM-resident (constant index_map); one step per token tile.
    h = jnp.dot(x_ref[...], w1_ref[...], preferred_element_type=jnp.float32)
    h = _gelu_exact_f32(h + b1_ref[...].astype(jnp.float32))
    # dropout (eval mode): identity
    acc = jnp.dot(h.astype(w2_ref.dtype), w2_ref[...],
                  preferred_element_type=jnp.float32)
    o_ref[...] = (acc + b2_ref[...].astype(jnp.float32)).astype(o_ref.dtype)


def _mlp_streamed_kernel(x_ref, w1_ref, b1_ref, w2_ref, b2_ref, o_ref, acc_ref):
    # x_ref: (tm, Din)   w1_ref: (Din, th)   b1_ref: (1, th)
    # w2_ref: (th, Dout) b2_ref: (1, Dout)   o_ref: (tm, Dout)
    # acc_ref: (tm, Dout) f32 scratch, persistent across the hidden-chunk axis.
    h_idx = pl.program_id(1)

    @pl.when(h_idx == 0)
    def _():
        # Fold fc2 bias into the accumulator init (saves an epilogue add pass).
        acc_ref[...] = jnp.broadcast_to(
            b2_ref[...].astype(jnp.float32), acc_ref.shape)

    h = jnp.dot(x_ref[...], w1_ref[...], preferred_element_type=jnp.float32)
    h = _gelu_exact_f32(h + b1_ref[...].astype(jnp.float32))
    # dropout (eval mode): identity
    acc_ref[...] += jnp.dot(h.astype(w2_ref.dtype), w2_ref[...],
                            preferred_element_type=jnp.float32)

    @pl.when(h_idx == pl.num_programs(1) - 1)
    def _():
        # second dropout (eval mode) is identity.
        o_ref[...] = acc_ref[...].astype(o_ref.dtype)


# --------------------------------------------------------------------------
# Wrapper
# --------------------------------------------------------------------------
@functools.partial(jax.jit, static_argnames=("tm", "th", "streamed"))
def mlp_forward(x, w1, b1, w2, b2, *, tm=512, th=1024, streamed=None):
    """x: (..., Din) -> (..., Dout).  Weights stored as (in, out); biases (1, dim).

    `streamed=None` auto-selects weight-resident vs weight-streamed paths;
    True/False forces a path (mainly for testing).
    """
    orig_shape = x.shape
    din = orig_shape[-1]
    hidden = w1.shape[1]
    dout = w2.shape[1]

    x2d = x.reshape(-1, din)
    m = x2d.shape[0]
    itemsize = jnp.dtype(x.dtype).itemsize

    din_pad = _round_up(din, _LANE_ALIGN)
    dout_pad = _round_up(dout, _LANE_ALIGN)
    h_lane = _round_up(hidden, _LANE_ALIGN)

    budget = _vmem_budget_bytes()

    # Token tile: large enough to stay MXU-bound when streaming weights; when
    # everything fits one tile but there is enough work, split in two so both
    # v7x TensorCores get a tile on the "parallel" token axis.
    m8 = _round_up(m, 8)
    if m8 <= tm:
        tm_eff = _round_up((m8 + 1) // 2, 8) if m8 >= 512 else m8
    else:
        tm_eff = tm
    m_pad = _round_up(m8, tm_eff)
    n_token_tiles = m_pad // tm_eff

    # --- resident-vs-streamed decision (conservative: 2x weights for buffers) ---
    weight_bytes = itemsize * (din_pad * h_lane + h_lane * dout_pad
                               + h_lane + dout_pad)
    resident_need = (2 * weight_bytes
                     + 2 * itemsize * tm_eff * (din_pad + dout_pad)  # x/out tiles
                     + 4 * tm_eff * h_lane                           # f32 GELU temp
                     + (4 << 20))                                    # headroom
    if streamed is None:
        resident = resident_need <= budget
    else:
        resident = not streamed

    # --- streamed-path hidden chunk (shrinks until it fits the budget) ---
    th_eff = min(_round_up(th, _LANE_ALIGN), h_lane)
    while True:
        streamed_need = (
            2 * itemsize * (tm_eff * din_pad + din_pad * th_eff + th_eff
                            + th_eff * dout_pad + dout_pad + tm_eff * dout_pad)
            + 4 * tm_eff * dout_pad        # resident f32 accumulator
            + 4 * tm_eff * th_eff          # f32 GELU temp
            + (4 << 20))
        if streamed_need <= budget or th_eff <= _LANE_ALIGN:
            break
        th_eff = max(_LANE_ALIGN, _round_up(th_eff // 2, _LANE_ALIGN))

    h_pad = h_lane if resident else _round_up(hidden, th_eff)

    # Zero padding is exact: padded Din lanes hit zero weight rows, padded hidden
    # units are GELU(0 + 0) = 0 so they add nothing to fc2, padded Dout lanes are
    # sliced off below.  Pads are skipped when already aligned; pre-pad weights
    # upstream to take them off the per-call path entirely.
    def _maybe_pad(a, pads):
        return a if all(p == (0, 0) for p in pads) else jnp.pad(a, pads)

    x_p = _maybe_pad(x2d, ((0, m_pad - m), (0, din_pad - din)))
    w1_p = _maybe_pad(w1, ((0, din_pad - din), (0, h_pad - hidden)))
    b1_p = _maybe_pad(b1.reshape(1, -1), ((0, 0), (0, h_pad - hidden)))
    w2_p = _maybe_pad(w2, ((0, h_pad - hidden), (0, dout_pad - dout)))
    b2_p = _maybe_pad(b2.reshape(1, -1), ((0, 0), (0, dout_pad - dout)))

    # --- cost estimate (counts real weight traffic for the chosen path) ---
    flops = 2 * m_pad * (din_pad * h_pad + h_pad * dout_pad)
    w_stream_bytes = itemsize * (din_pad * h_pad + h_pad * dout_pad
                                 + h_pad + dout_pad)
    w_traffic = w_stream_bytes if resident else n_token_tiles * w_stream_bytes
    bytes_accessed = itemsize * (m_pad * din_pad + m_pad * dout_pad) + w_traffic
    cost = pl.CostEstimate(flops=flops, transcendentals=m_pad * h_pad,
                           bytes_accessed=bytes_accessed)

    need = resident_need if resident else streamed_need
    vmem_limit = int(min(max(need, 32 << 20), budget))

    if resident:
        out2d = pl.pallas_call(
            _mlp_resident_kernel,
            out_shape=jax.ShapeDtypeStruct((m_pad, dout_pad), x.dtype),
            grid_spec=pltpu.PrefetchScalarGridSpec(
                num_scalar_prefetch=0,
                grid=(n_token_tiles,),
                in_specs=[
                    pl.BlockSpec((tm_eff, din_pad), lambda i: (i, 0)),
                    pl.BlockSpec((din_pad, h_pad), lambda i: (0, 0)),
                    pl.BlockSpec((1, h_pad), lambda i: (0, 0)),
                    pl.BlockSpec((h_pad, dout_pad), lambda i: (0, 0)),
                    pl.BlockSpec((1, dout_pad), lambda i: (0, 0)),
                ],
                out_specs=pl.BlockSpec((tm_eff, dout_pad), lambda i: (i, 0)),
            ),
            compiler_params=pltpu.CompilerParams(
                dimension_semantics=("parallel",),
                vmem_limit_bytes=vmem_limit,
            ),
            cost_estimate=cost,
        )(x_p, w1_p, b1_p, w2_p, b2_p)
    else:
        grid = (n_token_tiles, h_pad // th_eff)
        out2d = pl.pallas_call(
            _mlp_streamed_kernel,
            out_shape=jax.ShapeDtypeStruct((m_pad, dout_pad), x.dtype),
            grid_spec=pltpu.PrefetchScalarGridSpec(
                num_scalar_prefetch=0,
                grid=grid,
                in_specs=[
                    pl.BlockSpec((tm_eff, din_pad), lambda i, h: (i, 0)),
                    pl.BlockSpec((din_pad, th_eff), lambda i, h: (0, h)),
                    pl.BlockSpec((1, th_eff), lambda i, h: (0, h)),
                    pl.BlockSpec((th_eff, dout_pad), lambda i, h: (h, 0)),
                    pl.BlockSpec((1, dout_pad), lambda i, h: (0, 0)),
                ],
                out_specs=pl.BlockSpec((tm_eff, dout_pad), lambda i, h: (i, 0)),
                scratch_shapes=[pltpu.VMEM((tm_eff, dout_pad), jnp.float32)],
            ),
            compiler_params=pltpu.CompilerParams(
                dimension_semantics=("parallel", "arbitrary"),
                vmem_limit_bytes=vmem_limit,
            ),
            cost_estimate=cost,
        )(x_p, w1_p, b1_p, w2_p, b2_p)

    out2d = out2d[:m, :dout]
    return out2d.reshape(*orig_shape[:-1], dout)


# --------------------------------------------------------------------------
# Init / reference / tests
# --------------------------------------------------------------------------
def init_params(key, in_features, hidden_features, out_features):
    """Deterministic init mimicking nn.Linear (uniform(-1/sqrt(fan_in), 1/sqrt(fan_in)))."""
    k1, k2, k3, k4 = jax.random.split(key, 4)
    lim1 = 1.0 / jnp.sqrt(in_features)
    lim2 = 1.0 / jnp.sqrt(hidden_features)
    # Stored transposed relative to PyTorch: (in, out) so the kernel does x @ W.
    w1 = jax.random.uniform(k1, (in_features, hidden_features), jnp.float32, -lim1, lim1)
    b1 = jax.random.uniform(k2, (1, hidden_features), jnp.float32, -lim1, lim1)
    w2 = jax.random.uniform(k3, (hidden_features, out_features), jnp.float32, -lim2, lim2)
    b2 = jax.random.uniform(k4, (1, out_features), jnp.float32, -lim2, lim2)
    return w1, b1, w2, b2


def mlp_reference(x, w1, b1, w2, b2):
    h = jax.nn.gelu(jnp.dot(x, w1) + b1.reshape(-1), approximate=False)
    return jnp.dot(h, w2) + b2.reshape(-1)


if __name__ == "__main__":
    # ---- Test 1: toy shapes implied by the module (f32, resident path) ----
    batch, seq = 2, 8
    in_features, hidden_features, out_features = 32, 64, 32

    key = jax.random.PRNGKey(0)
    kx, kp = jax.random.split(key)
    x = jax.random.normal(kx, (batch, seq, in_features), jnp.float32)
    w1, b1, w2, b2 = init_params(kp, in_features, hidden_features, out_features)

    out = jax.block_until_ready(mlp_forward(x, w1, b1, w2, b2))
    ref = mlp_reference(x, w1, b1, w2, b2)
    assert out.shape == (batch, seq, out_features)
    assert jnp.allclose(out, ref, atol=1e-5, rtol=1e-5), "f32 mismatch vs reference"

    # ---- Test 2: MXU-shaped dims, bf16 operands, resident path ----
    batch2, seq2 = 2, 128
    in2, hid2, out2sz = 128, 512, 128
    kx2, kp2 = jax.random.split(jax.random.PRNGKey(1))
    x2 = jax.random.normal(kx2, (batch2, seq2, in2), jnp.float32).astype(jnp.bfloat16)
    p2 = init_params(kp2, in2, hid2, out2sz)
    w1b, b1b, w2b, b2b = [a.astype(jnp.bfloat16) for a in p2]

    out2 = jax.block_until_ready(mlp_forward(x2, w1b, b1b, w2b, b2b))
    ref2 = mlp_reference(x2.astype(jnp.float32), w1b.astype(jnp.float32),
                         b1b.astype(jnp.float32), w2b.astype(jnp.float32),
                         b2b.astype(jnp.float32))
    assert out2.shape == (batch2, seq2, out2sz)
    assert jnp.allclose(out2.astype(jnp.float32), ref2, atol=5e-2, rtol=5e-2), \
        "bf16 mismatch vs reference (resident path)"

    # ---- Test 3: force the streamed (hidden-chunked) path, multi-chunk grid ----
    out3 = jax.block_until_ready(
        mlp_forward(x2, w1b, b1b, w2b, b2b, th=256, streamed=True))
    assert jnp.allclose(out3.astype(jnp.float32), ref2, atol=5e-2, rtol=5e-2), \
        "bf16 mismatch vs reference (streamed path)"

    print("KERNEL_OK")
</pallas_src>

<mosaic_0001>
module attributes {stable_mosaic.version = 11 : i64} {
  func.func @_mlp_resident_kernel(%arg0: i32, %arg1: memref<16x256xf32, #tpu.memory_space<vmem>>, %arg2: memref<256x256xf32, #tpu.memory_space<vmem>>, %arg3: memref<1x256xf32, #tpu.memory_space<vmem>>, %arg4: memref<256x256xf32, #tpu.memory_space<vmem>>, %arg5: memref<1x256xf32, #tpu.memory_space<vmem>>, %arg6: memref<16x256xf32, #tpu.memory_space<vmem>>) attributes {dimension_semantics = [#tpu.dimension_semantics<parallel>], iteration_bounds = array<i64: 1>, scalar_prefetch = 0 : i64, scratch_operands = 0 : i64, tpu.core_type = #tpu.core_type<tc>, window_params = [{transform_indices = @transform_0, window_bounds = array<i64: 16, 256>}, {pipeline_mode = #tpu.pipeline_mode<synchronous>, transform_indices = @transform_1, window_bounds = array<i64: 256, 256>}, {pipeline_mode = #tpu.pipeline_mode<synchronous>, transform_indices = @transform_2, window_bounds = array<i64: 1, 256>}, {pipeline_mode = #tpu.pipeline_mode<synchronous>, transform_indices = @transform_3, window_bounds = array<i64: 256, 256>}, {pipeline_mode = #tpu.pipeline_mode<synchronous>, transform_indices = @transform_4, window_bounds = array<i64: 1, 256>}, {transform_indices = @transform_5, window_bounds = array<i64: 16, 256>}]} {
    %c0 = arith.constant 0 : index
    %c0_0 = arith.constant 0 : index
    %0 = vector.load %arg1[%c0, %c0_0] : memref<16x256xf32, #tpu.memory_space<vmem>>, vector<16x256xf32>
    %c0_1 = arith.constant 0 : index
    %c0_2 = arith.constant 0 : index
    %1 = vector.load %arg2[%c0_1, %c0_2] : memref<256x256xf32, #tpu.memory_space<vmem>>, vector<256x256xf32>
    %cst = arith.constant dense<0.000000e+00> : vector<16x256xf32>
    %2 = tpu.matmul %0, %1, %cst {dimension_numbers = #tpu.dot_dimension_numbers<[1], [0], [0], [1], [0, 0, 1, 1], [], []>} : vector<16x256xf32>, vector<256x256xf32>, vector<16x256xf32> -> vector<16x256xf32>
    %c0_3 = arith.constant 0 : index
    %c0_4 = arith.constant 0 : index
    %3 = vector.load %arg3[%c0_3, %c0_4] : memref<1x256xf32, #tpu.memory_space<vmem>>, vector<1x256xf32>
    %4 = vector.broadcast %3 : vector<1x256xf32> to vector<16x256xf32>
    %5 = arith.addf %2, %4 : vector<16x256xf32>
    %cst_5 = arith.constant 5.000000e-01 : f32
    %6 = vector.broadcast %cst_5 : f32 to vector<16x256xf32>
    %7 = arith.mulf %6, %5 : vector<16x256xf32>
    %cst_6 = arith.constant 0.707106769 : f32
    %8 = vector.broadcast %cst_6 : f32 to vector<16x256xf32>
    %9 = arith.mulf %5, %8 : vector<16x256xf32>
    %10 = math.erf %9 : vector<16x256xf32>
    %cst_7 = arith.constant 1.000000e+00 : f32
    %11 = vector.broadcast %cst_7 : f32 to vector<16x256xf32>
    %12 = arith.addf %11, %10 : vector<16x256xf32>
    %13 = arith.mulf %7, %12 : vector<16x256xf32>
    %c0_8 = arith.constant 0 : index
    %c0_9 = arith.constant 0 : index
    %14 = vector.load %arg4[%c0_8, %c0_9] : memref<256x256xf32, #tpu.memory_space<vmem>>, vector<256x256xf32>
    %cst_10 = arith.constant dense<0.000000e+00> : vector<16x256xf32>
    %15 = tpu.matmul %13, %14, %cst_10 {dimension_numbers = #tpu.dot_dimension_numbers<[1], [0], [0], [1], [0, 0, 1, 1], [], []>} : vector<16x256xf32>, vector<256x256xf32>, vector<16x256xf32> -> vector<16x256xf32>
    %c0_11 = arith.constant 0 : index
    %c0_12 = arith.constant 0 : index
    %16 = vector.load %arg5[%c0_11, %c0_12] : memref<1x256xf32, #tpu.memory_space<vmem>>, vector<1x256xf32>
    %17 = vector.broadcast %16 : vector<1x256xf32> to vector<16x256xf32>
    %18 = arith.addf %15, %17 : vector<16x256xf32>
    %c0_13 = arith.constant 0 : index
    %c0_14 = arith.constant 0 : index
    %19 = vector.load %arg6[%c0_13, %c0_14] : memref<16x256xf32, #tpu.memory_space<vmem>>, vector<16x256xf32>
    tpu.vector_store %arg6[%c0_13, %c0_14], %18 {strides = array<i32>} : memref<16x256xf32, #tpu.memory_space<vmem>>, vector<16x256xf32>,
    return
  }
  func.func @transform_0(%arg0: i32) -> (i32, i32) {
    %c0_i32 = arith.constant 0 : i32
    %c0_i32_0 = arith.constant 0 : i32
    return %arg0, %c0_i32 : i32, i32
  }
  func.func @transform_1(%arg0: i32) -> (i32, i32) {
    %c0_i32 = arith.constant 0 : i32
    %c0_i32_0 = arith.constant 0 : i32
    %c0_i32_1 = arith.constant 0 : i32
    return %c0_i32, %c0_i32_0 : i32, i32
  }
  func.func @transform_2(%arg0: i32) -> (i32, i32) {
    %c0_i32 = arith.constant 0 : i32
    %c0_i32_0 = arith.constant 0 : i32
    %c0_i32_1 = arith.constant 0 : i32
    return %c0_i32, %c0_i32_0 : i32, i32
  }
  func.func @transform_3(%arg0: i32) -> (i32, i32) {
    %c0_i32 = arith.constant 0 : i32
    %c0_i32_0 = arith.constant 0 : i32
    %c0_i32_1 = arith.constant 0 : i32
    return %c0_i32, %c0_i32_0 : i32, i32
  }
  func.func @transform_4(%arg0: i32) -> (i32, i32) {
    %c0_i32 = arith.constant 0 : i32
    %c0_i32_0 = arith.constant 0 : i32
    %c0_i32_1 = arith.constant 0 : i32
    return %c0_i32, %c0_i32_0 : i32, i32
  }
  func.func @transform_5(%arg0: i32) -> (i32, i32) {
    %c0_i32 = arith.constant 0 : i32
    %c0_i32_0 = arith.constant 0 : i32
    return %arg0, %c0_i32 : i32, i32
  }
}

</mosaic_0001>

<bundles_post_ra>
// kernel: mlp_forward.1
= control target key start
LH: loop header
LB: loop body
LE: loop exit
PB: predicated region body
PF: predicated region fallthrough
CT: control target
= control target key end

     0   :  { %s938_s1 = inlined_call_operand.vmem [shape: f32[256,256], index: 1, kind: input, shape index: {}]   ;;  %s939_s0 = inlined_call_operand.vmem [shape: f32[16,256], index: 0, kind: input, shape index: {}]   ;;  %s940_s3 = inlined_call_operand.vmem [shape: f32[256,256], index: 3, kind: input, shape index: {}]   ;;  %s941_s2 = inlined_call_operand.vmem [shape: f32[1,256], index: 2, kind: input, shape index: {}]   ;;  %s942_s4 = inlined_call_operand.vmem [shape: f32[1,256], index: 4, kind: input, shape index: {}]   ;;  %s943_s5 = inlined_call_operand.vmem [shape: f32[16,256], index: 5, kind: output, shape index: {}]  }
   0x1   :  { %v25_v0 = vld [vmem:[%s938_s1 + $0x8] sm:$0xff]  ;;  %v27_v1 = vld [vmem:[%s938_s1 + $0x18] sm:$0xff]  ;;  %v24_v2 = vld [vmem:[%s938_s1] sm:$0xff] }
   0x2   :  { %v358_v3 = vpack.c.bf16 %v27_v1, %v25_v0  ;;  %v26_v4 = vld [vmem:[%s938_s1 + $0x10] sm:$0xff]  ;;  %v29_v5 = vld [vmem:[%s938_s1 + $0x28] sm:$0xff]  ;;  %v31_v6 = vld [vmem:[%s938_s1 + $0x38] sm:$0xff] }
   0x3   :  { %v360_v7 = vpack.c.bf16 %v26_v4, %v24_v2  ;;  %v362_v8 = vpack.c.bf16 %v31_v6, %v29_v5  ;;  %v28_v9 = vld [vmem:[%s938_s1 + $0x20] sm:$0xff]  ;;  %v30_v10 = vld [vmem:[%s938_s1 + $0x30] sm:$0xff]  ;;  %v33_v11 = vld [vmem:[%s938_s1 + $0x48] sm:$0xff] }
   0x4   :  { %359 = vmatprep.subr.bf16.mxu0 %v358_v3  ;;  %v35_v12 = vld [vmem:[%s938_s1 + $0x58] sm:$0xff]  ;;  %v364_v13 = vpack.c.bf16 %v30_v10, %v28_v9  ;;  %v32_v15 = vld [vmem:[%s938_s1 + $0x40] sm:$0xff]  ;;  %v34_v16 = vld [vmem:[%s938_s1 + $0x50] sm:$0xff] }
   0x5   :  { %361 = vmatpush1.bf16.msra.mxu0 %v360_v7  ;;  %v366_v14 = vpack.c.bf16 %v35_v12, %v33_v11  ;;  %v37_v17 = vld [vmem:[%s938_s1 + $0x68] sm:$0xff]  ;;  %v39_v18 = vld [vmem:[%s938_s1 + $0x78] sm:$0xff]  ;;  %v368_v19 = vpack.c.bf16 %v34_v16, %v32_v15  ;;  %v36_v21 = vld [vmem:[%s938_s1 + $0x60] sm:$0xff] }
   0x6   :  { %363 = vmatprep.subr.bf16.mxu0 %v362_v8  ;;  %v370_v20 = vpack.c.bf16 %v39_v18, %v37_v17  ;;  %v38_v22 = vld [vmem:[%s938_s1 + $0x70] sm:$0xff]  ;;  %v41_v23 = vld [vmem:[%s938_s1 + $0x88] sm:$0xff]  ;;  %v43_v24 = vld [vmem:[%s938_s1 + $0x98] sm:$0xff] }
   0x7   :  { %v372_v25 = vpack.c.bf16 %v38_v22, %v36_v21  ;;  %v374_v26 = vpack.c.bf16 %v43_v24, %v41_v23  ;;  %v40_v27 = vld [vmem:[%s938_s1 + $0x80] sm:$0xff]  ;;  %v42_v28 = vld [vmem:[%s938_s1 + $0x90] sm:$0xff]  ;;  %v45_v29 = vld [vmem:[%s938_s1 + $0xa8] sm:$0xff] }
   0x8   :  { %v47_v30 = vld [vmem:[%s938_s1 + $0xb8] sm:$0xff]  ;;  %v376_v31 = vpack.c.bf16 %v42_v28, %v40_v27  ;;  %v44_v33 = vld [vmem:[%s938_s1 + $0xa0] sm:$0xff]  ;;  %v46_v34 = vld [vmem:[%s938_s1 + $0xb0] sm:$0xff] }
   0x9   :  { %365 = vmatpush1.bf16.msra.mxu0 %v364_v13  ;;  %v378_v32 = vpack.c.bf16 %v47_v30, %v45_v29  ;;  %v49_v35 = vld [vmem:[%s938_s1 + $0xc8] sm:$0xff]  ;;  %v51_v36 = vld [vmem:[%s938_s1 + $0xd8] sm:$0xff]  ;;  %v380_v37 = vpack.c.bf16 %v46_v34, %v44_v33  ;;  %v48_v39 = vld [vmem:[%s938_s1 + $0xc0] sm:$0xff] }
   0xa   :  { %367 = vmatprep.subr.bf16.mxu0 %v366_v14  ;;  %v382_v38 = vpack.c.bf16 %v51_v36, %v49_v35  ;;  %v50_v40 = vld [vmem:[%s938_s1 + $0xd0] sm:$0xff]  ;;  %v21_v41 = vld [vmem:[%s939_s0 + $0x8] sm:$0xff]  ;;  %v55_v43 = vld [vmem:[%s938_s1 + $0xf8] sm:$0xff] }
   0xb   :  { %v53_v42 = vld [vmem:[%s938_s1 + $0xe8] sm:$0xff]  ;;  %164 = vmatprep.mubr.f32.mxu0 %v21_v41  ;;  %v52_v45 = vld [vmem:[%s938_s1 + $0xe0] sm:$0xff]  ;;  %v54_v46 = vld [vmem:[%s938_s1 + $0xf0] sm:$0xff]  ;;  %v384_v50 = vpack.c.bf16 %v50_v40, %v48_v39 }
   0xc   :  { %v198_v44 = vld [vmem:[%s940_s3 + $0x8] sm:$0xff]  ;;  %v200_v47 = vld [vmem:[%s940_s3 + $0x18] sm:$0xff]  ;;  %v197_v48 = vld [vmem:[%s940_s3] sm:$0xff]  ;;  %v386_v56 = vpack.c.bf16 %v55_v43, %v53_v42  ;;  %v388_v0 = vpack.c.bf16 %v54_v46, %v52_v45 }
   0xd   :  { %369 = vmatpush1.bf16.msra.mxu0 %v368_v19  ;;  %v199_v49 = vld [vmem:[%s940_s3 + $0x10] sm:$0xff]  ;;  %v422_v51 = vpack.c.bf16 %v200_v47, %v198_v44  ;;  %v202_v53 = vld [vmem:[%s940_s3 + $0x28] sm:$0xff]  ;;  %v204_v54 = vld [vmem:[%s940_s3 + $0x38] sm:$0xff] }
   0xe   :  { %371 = vmatprep.subr.bf16.mxu0 %v370_v20  ;;  %v424_v52 = vpack.c.bf16 %v199_v49, %v197_v48  ;;  %v201_v55 = vld [vmem:[%s940_s3 + $0x20] sm:$0xff]  ;;  %v426_v57 = vpack.c.bf16 %v204_v54, %v202_v53  ;;  %v203_v58 = vld [vmem:[%s940_s3 + $0x30] sm:$0xff]  ;;  %v206_v59 = vld [vmem:[%s940_s3 + $0x48] sm:$0xff] }
   0xf   :  { %v208_v60 = vld [vmem:[%s940_s3 + $0x58] sm:$0xff]  ;;  %v57_v61 = vld [vmem:[%s938_s1 + $0x108] sm:$0xff]  ;;  %423 = vmatprep.subr.bf16.mxu1 %v422_v51  ;;  %v428_v63 = vpack.c.bf16 %v203_v58, %v201_v55  ;;  %v56_v1 = vld [vmem:[%s938_s1 + $0x100] sm:$0xff] }
  0x10   :  { %v59_v62 = vld [vmem:[%s938_s1 + $0x118] sm:$0xff]  ;;  %425 = vmatpush1.bf16.msra.mxu1 %v424_v52  ;;  %v430_v2 = vpack.c.bf16 %v208_v60, %v206_v59  ;;  %v205_v3 = vld [vmem:[%s940_s3 + $0x40] sm:$0xff]  ;;  %v207_v4 = vld [vmem:[%s940_s3 + $0x50] sm:$0xff] }
  0x11   :  { %373 = vmatpush1.bf16.msra.mxu0 %v372_v25  ;;  %427 = vmatprep.subr.bf16.mxu1 %v426_v57  ;;  %v390_v5 = vpack.c.bf16 %v59_v62, %v57_v61  ;;  %v58_v6 = vld [vmem:[%s938_s1 + $0x110] sm:$0xff]  ;;  %v210_v7 = vld [vmem:[%s940_s3 + $0x68] sm:$0xff]  ;;  %v212_v8 = vld [vmem:[%s940_s3 + $0x78] sm:$0xff]  ;;  %v432_v11 = vpack.c.bf16 %v207_v4, %v205_v3 }
  0x12   :  { %375 = vmatprep.subr.bf16.mxu0 %v374_v26  ;;  %v61_v9 = vld [vmem:[%s938_s1 + $0x128] sm:$0xff]  ;;  %v63_v10 = vld [vmem:[%s938_s1 + $0x138] sm:$0xff]  ;;  %v392_v12 = vpack.c.bf16 %v58_v6, %v56_v1  ;;  %v60_v13 = vld [vmem:[%s938_s1 + $0x120] sm:$0xff]  ;;  %v434_v14 = vpack.c.bf16 %v212_v8, %v210_v7 }
  0x13   :  { %v209_v15 = vld [vmem:[%s940_s3 + $0x60] sm:$0xff]  ;;  %v211_v16 = vld [vmem:[%s940_s3 + $0x70] sm:$0xff]  ;;  %v394_v17 = vpack.c.bf16 %v63_v10, %v61_v9  ;;  %v214_v19 = vld [vmem:[%s940_s3 + $0x88] sm:$0xff] }
  0x14   :  { %429 = vmatpush1.bf16.msra.mxu1 %v428_v63  ;;  %v62_v18 = vld [vmem:[%s938_s1 + $0x130] sm:$0xff]  ;;  %v216_v20 = vld [vmem:[%s940_s3 + $0x98] sm:$0xff]  ;;  %v65_v21 = vld [vmem:[%s938_s1 + $0x148] sm:$0xff]  ;;  %v436_v23 = vpack.c.bf16 %v211_v16, %v209_v15 }
  0x15   :  { %377 = vmatpush1.bf16.msra.mxu0 %v376_v31  ;;  %431 = vmatprep.subr.bf16.mxu1 %v430_v2  ;;  %v67_v22 = vld [vmem:[%s938_s1 + $0x158] sm:$0xff]  ;;  %v396_v24 = vpack.c.bf16 %v62_v18, %v60_v13  ;;  %v64_v25 = vld [vmem:[%s938_s1 + $0x140] sm:$0xff]  ;;  %v438_v26 = vpack.c.bf16 %v216_v20, %v214_v19  ;;  %v215_v28 = vld [vmem:[%s940_s3 + $0x90] sm:$0xff] }
  0x16   :  { %379 = vmatprep.subr.bf16.mxu0 %v378_v32  ;;  %v213_v27 = vld [vmem:[%s940_s3 + $0x80] sm:$0xff]  ;;  %v398_v29 = vpack.c.bf16 %v67_v22, %v65_v21  ;;  %v66_v30 = vld [vmem:[%s938_s1 + $0x150] sm:$0xff]  ;;  %v218_v31 = vld [vmem:[%s940_s3 + $0xa8] sm:$0xff] }
  0x17   :  { %v220_v32 = vld [vmem:[%s940_s3 + $0xb8] sm:$0xff]  ;;  %v69_v33 = vld [vmem:[%s938_s1 + $0x168] sm:$0xff]  ;;  %v440_v35 = vpack.c.bf16 %v215_v28, %v213_v27  ;;  %v400_v36 = vpack.c.bf16 %v66_v30, %v64_v25  ;;  %v217_v39 = vld [vmem:[%s940_s3 + $0xa0] sm:$0xff] }
  0x18   :  { %433 = vmatpush1.bf16.msra.mxu1 %v432_v11  ;;  %v71_v34 = vld [vmem:[%s938_s1 + $0x178] sm:$0xff]  ;;  %v219_v40 = vld [vmem:[%s940_s3 + $0xb0] sm:$0xff]  ;;  %v222_v43 = vld [vmem:[%s940_s3 + $0xc8] sm:$0xff] }
  0x19   :  { %381 = vmatpush1.bf16.msra.mxu0 %v380_v37  ;;  %435 = vmatprep.subr.bf16.mxu1 %v434_v14  ;;  %v68_v37 = vld [vmem:[%s938_s1 + $0x160] sm:$0xff]  ;;  %v402_v41 = vpack.c.bf16 %v71_v34, %v69_v33  ;;  %v70_v42 = vld [vmem:[%s938_s1 + $0x170] sm:$0xff]  ;;  %v224_v44 = vld [vmem:[%s940_s3 + $0xd8] sm:$0xff]  ;;  %v444_v47 = vpack.c.bf16 %v219_v40, %v217_v39 }
  0x1a   :  { %383 = vmatprep.subr.bf16.mxu0 %v382_v38  ;;  %v442_v38 = vpack.c.bf16 %v220_v32, %v218_v31  ;;  %v73_v45 = vld [vmem:[%s938_s1 + $0x188] sm:$0xff]  ;;  %v75_v46 = vld [vmem:[%s938_s1 + $0x198] sm:$0xff]  ;;  %v404_v48 = vpack.c.bf16 %v70_v42, %v68_v37  ;;  %v72_v49 = vld [vmem:[%s938_s1 + $0x180] sm:$0xff] }
  0x1b   :  { %v221_v51 = vld [vmem:[%s940_s3 + $0xc0] sm:$0xff]  ;;  %v223_v52 = vld [vmem:[%s940_s3 + $0xd0] sm:$0xff]  ;;  %v406_v53 = vpack.c.bf16 %v75_v46, %v73_v45  ;;  %v226_v55 = vld [vmem:[%s940_s3 + $0xe8] sm:$0xff] }
  0x1c   :  { %437 = vmatpush1.bf16.msra.mxu1 %v436_v23  ;;  %v74_v54 = vld [vmem:[%s938_s1 + $0x190] sm:$0xff]  ;;  %v77_v57 = vld [vmem:[%s938_s1 + $0x1a8] sm:$0xff]  ;;  %v79_v58 = vld [vmem:[%s938_s1 + $0x1b8] sm:$0xff]  ;;  %v448_v59 = vpack.c.bf16 %v223_v52, %v221_v51 }
  0x1d   :  { %385 = vmatpush1.bf16.msra.mxu0 %v384_v50  ;;  %439 = vmatprep.subr.bf16.mxu1 %v438_v26  ;;  %v446_v50 = vpack.c.bf16 %v224_v44, %v222_v43  ;;  %v408_v60 = vpack.c.bf16 %v74_v54, %v72_v49  ;;  %v76_v61 = vld [vmem:[%s938_s1 + $0x1a0] sm:$0xff]  ;;  %v410_v1 = vpack.c.bf16 %v79_v58, %v77_v57  ;;  %v78_v2 = vld [vmem:[%s938_s1 + $0x1b0] sm:$0xff]  ;;  %v230_v3 = vld [vmem:[%s940_s3 + $0x108] sm:$0xff] }
  0x1e   :  { %387 = vmatprep.subr.bf16.mxu0 %v386_v56  ;;  %v228_v56 = vld [vmem:[%s940_s3 + $0xf8] sm:$0xff]  ;;  %v225_v63 = vld [vmem:[%s940_s3 + $0xe0] sm:$0xff]  ;;  %v412_v8 = vpack.c.bf16 %v78_v2, %v76_v61  ;;  %v82_v14 = vld [vmem:[%s938_s1 + $0x1d0] sm:$0xff] }
  0x1f   :  { %v450_v62 = vpack.c.bf16 %v228_v56, %v226_v55  ;;  %v232_v4 = vld [vmem:[%s940_s3 + $0x118] sm:$0xff]  ;;  %v80_v9 = vld [vmem:[%s938_s1 + $0x1c0] sm:$0xff]  ;;  %v234_v15 = vld [vmem:[%s940_s3 + $0x128] sm:$0xff] }
  0x20   :  { %441 = vmatpush1.bf16.msra.mxu1 %v440_v35  ;;  %v83_v6 = vld [vmem:[%s938_s1 + $0x1d8] sm:$0xff]  ;;  %v454_v10 = vpack.c.bf16 %v232_v4, %v230_v3  ;;  %v229_v11 = vld [vmem:[%s940_s3 + $0x100] sm:$0xff]  ;;  %v416_v20 = vpack.c.bf16 %v82_v14, %v80_v9  ;;  %v86_v26 = vld [vmem:[%s938_s1 + $0x1f0] sm:$0xff]  ;;  %v90_v4 = vlaneseq }
  0x21   :  { %389 = vmatpush1.bf16.msra.mxu0 %v388_v0  ;;  %443 = vmatprep.subr.bf16.mxu1 %v442_v38  ;;  %v227_v0 = vld [vmem:[%s940_s3 + $0xf0] sm:$0xff]  ;;  %v236_v16 = vld [vmem:[%s940_s3 + $0x138] sm:$0xff]  ;;  %v84_v21 = vld [vmem:[%s938_s1 + $0x1e0] sm:$0xff] }
  0x22   :  { %391 = vmatprep.subr.bf16.mxu0 %v390_v5  ;;  %v81_v5 = vld [vmem:[%s938_s1 + $0x1c8] sm:$0xff]  ;;  %v452_v7 = vpack.c.bf16 %v227_v0, %v225_v63  ;;  %v87_v18 = vld [vmem:[%s938_s1 + $0x1f8] sm:$0xff]  ;;  %v458_v22 = vpack.c.bf16 %v236_v16, %v234_v15  ;;  %v233_v23 = vld [vmem:[%s940_s3 + $0x120] sm:$0xff]  ;;  %v420_v30 = vpack.c.bf16 %v86_v26, %v84_v21 }
  0x23   :  { %v414_v13 = vpack.c.bf16 %v83_v6, %v81_v5  ;;  %v238_v27 = vld [vmem:[%s940_s3 + $0x148] sm:$0xff]  ;;  %v240_v28 = vld [vmem:[%s940_s3 + $0x158] sm:$0xff]  ;;  %v237_v32 = vld [vmem:[%s940_s3 + $0x140] sm:$0xff]  ;;  %v91_v5 = vshrl.u32 %v90_v4, 7 }
  0x24   :  { %445 = vmatpush1.bf16.msra.mxu1 %v444_v47  ;;  %v462_v31 = vpack.c.bf16 %v240_v28, %v238_v27  ;;  %v239_v33 = vld [vmem:[%s940_s3 + $0x150] sm:$0xff]  ;;  %v20_v35 = vld [vmem:[%s939_s0] sm:$0xff]  ;;  %v242_v38 = vld [vmem:[%s940_s3 + $0x168] sm:$0xff] }
  0x25   :  { %393 = vmatpush1.bf16.msra.mxu0 %v392_v12  ;;  %447 = vmatprep.subr.bf16.mxu1 %v446_v50  ;;  %v231_v12 = vld [vmem:[%s940_s3 + $0x110] sm:$0xff]  ;;  %v464_v34 = vpack.c.bf16 %v239_v33, %v237_v32  ;;  %v244_v39 = vld [vmem:[%s940_s3 + $0x178] sm:$0xff]  ;;  %v246_v44 = vld [vmem:[%s940_s3 + $0x188] sm:$0xff]  ;;  %v92_v6 = vsub.s32 0, %v91_v5 }
  0x26   :  { %395 = vmatprep.subr.bf16.mxu0 %v394_v17  ;;  %v85_v17 = vld [vmem:[%s938_s1 + $0x1e8] sm:$0xff]  ;;  %v456_v19 = vpack.c.bf16 %v231_v12, %v229_v11  ;;  %v22_v37 = vld [vmem:[%s939_s0 + $0x10] sm:$0xff]  ;;  %v466_v40 = vpack.c.bf16 %v244_v39, %v242_v38  ;;  %v248_v45 = vld [vmem:[%s940_s3 + $0x198] sm:$0xff] }
  0x27   :  { %v418_v25 = vpack.c.bf16 %v87_v18, %v85_v17  ;;  %v243_v42 = vld [vmem:[%s940_s3 + $0x170] sm:$0xff]  ;;  %v470_v46 = vpack.c.bf16 %v248_v45, %v246_v44  ;;  %v245_v47 = vld [vmem:[%s940_s3 + $0x180] sm:$0xff]  ;;  %v250_v50 = vld [vmem:[%s940_s3 + $0x1a8] sm:$0xff] }
  0x28   :  { %449 = vmatpush1.bf16.msra.mxu1 %v448_v59  ;;  %v252_v51 = vld [vmem:[%s940_s3 + $0x1b8] sm:$0xff]  ;;  %v251_v54 = vld [vmem:[%s940_s3 + $0x1b0] sm:$0xff]  ;;  %v254_v56 = vld [vmem:[%s940_s3 + $0x1c8] sm:$0xff] }
  0x29   :  { %397 = vmatpush1.bf16.msra.mxu0 %v396_v24  ;;  %451 = vmatprep.subr.bf16.mxu1 %v450_v62  ;;  %v235_v24 = vld [vmem:[%s940_s3 + $0x130] sm:$0xff]  ;;  %v474_v52 = vpack.c.bf16 %v252_v51, %v250_v50  ;;  %v256_v57 = vld [vmem:[%s940_s3 + $0x1d8] sm:$0xff]  ;;  %v253_v59 = vld [vmem:[%s940_s3 + $0x1c0] sm:$0xff] }
  0x2a   :  { %399 = vmatprep.subr.bf16.mxu0 %v398_v29  ;;  %v460_v29 = vpack.c.bf16 %v235_v24, %v233_v23  ;;  %v478_v58 = vpack.c.bf16 %v256_v57, %v254_v56  ;;  %v258_v62 = vld [vmem:[%s940_s3 + $0x1e8] sm:$0xff]  ;;  %v260_v63 = vld [vmem:[%s940_s3 + $0x1f8] sm:$0xff]  ;;  %v259_v2 = vld [vmem:[%s940_s3 + $0x1f0] sm:$0xff] }
  0x2b   :  { %v482_v0 = vpack.c.bf16 %v260_v63, %v258_v62  ;;  %v261_v39 = vld [vmem:[%s942_s4] sm:$0x3] }
  0x2c   :  { %453 = vmatpush1.bf16.msra.mxu1 %v452_v7  ;;  %v88_v7 = vld [vmem:[%s941_s2] sm:$0x3] }
  0x2d   :  { %401 = vmatpush1.bf16.msra.mxu0 %v400_v36  ;;  %455 = vmatprep.subr.bf16.mxu1 %v454_v10  ;;  %v23_v36 = vld [vmem:[%s939_s0 + $0x18] sm:$0xff]  ;;  %v93_v9 = vrot.slane %v88_v7, %v92_v6 }
  0x2e   :  { %403 = vmatprep.subr.bf16.mxu0 %v402_v41  ;;  %v241_v41 = vld [vmem:[%s940_s3 + $0x160] sm:$0xff] }
  0x2f   :  { %v468_v43 = vpack.c.bf16 %v243_v42, %v241_v41 }
  0x30   :  { %457 = vmatpush1.bf16.msra.mxu1 %v456_v19 }
  0x31   :  { %405 = vmatpush1.bf16.msra.mxu0 %v404_v48  ;;  %459 = vmatprep.subr.bf16.mxu1 %v458_v22  ;;  %v247_v48 = vld [vmem:[%s940_s3 + $0x190] sm:$0xff] }
  0x32   :  { %407 = vmatprep.subr.bf16.mxu0 %v406_v53  ;;  %v472_v49 = vpack.c.bf16 %v247_v48, %v245_v47  ;;  %v249_v53 = vld [vmem:[%s940_s3 + $0x1a0] sm:$0xff] }
  0x33   :  { %v476_v55 = vpack.c.bf16 %v251_v54, %v249_v53 }
  0x34   :  { %461 = vmatpush1.bf16.msra.mxu1 %v460_v29 }
  0x35   :  { %409 = vmatpush1.bf16.msra.mxu0 %v408_v60  ;;  %463 = vmatprep.subr.bf16.mxu1 %v462_v31  ;;  %v255_v60 = vld [vmem:[%s940_s3 + $0x1d0] sm:$0xff] }
  0x36   :  { %411 = vmatprep.subr.bf16.mxu0 %v410_v1  ;;  %v480_v61 = vpack.c.bf16 %v255_v60, %v253_v59  ;;  %v257_v1 = vld [vmem:[%s940_s3 + $0x1e0] sm:$0xff] }
  0x37   :  { %v484_v3 = vpack.c.bf16 %v259_v2, %v257_v1 }
  0x38   :  { %465 = vmatpush1.bf16.msra.mxu1 %v464_v34 }
  0x39   :  { %413 = vmatpush1.bf16.msra.mxu0 %v412_v8  ;;  %467 = vmatprep.subr.bf16.mxu1 %v466_v40  ;;  %v96_v8 = vsub.s32 1, %v91_v5  ;;  %v266_v40 = vrot.slane %v261_v39, %v92_v6 }
  0x3a   :  { %415 = vmatprep.subr.bf16.mxu0 %v414_v13 }
  0x3b   :  { %v97_v10 = vrot.slane %v88_v7, %v96_v8  ;;  %v270_v41 = vrot.slane %v261_v39, %v96_v8 }
  0x3c   :  { %469 = vmatpush1.bf16.msra.mxu1 %v468_v43 }
  0x3d   :  { %417 = vmatpush1.bf16.msra.mxu0 %v416_v20  ;;  %471 = vmatprep.subr.bf16.mxu1 %v470_v46 }
  0x3e   :  { %419 = vmatprep.subr.bf16.mxu0 %v418_v25 }
  0x40   :  { %473 = vmatpush1.bf16.msra.mxu1 %v472_v49 }
  0x41   :  { %421 = vmatpush1.bf16.msra.mxu0 %v420_v30  ;;  %475 = vmatprep.subr.bf16.mxu1 %v474_v52 }
  0x44   :  { %165 = vmatmul.mubr.f32.vlgmr.msra.gmra.mrb[0].mxu0 %v20_v35  ;;  %477 = vmatpush1.bf16.msra.mxu1 %v476_v55 }
  0x45   :  { %170 = vmatprep.mubr.f32.mxu0 %v23_v36  ;;  %479 = vmatprep.subr.bf16.mxu1 %v478_v58 }
  0x48   :  { %171 = vmatmul.mubr.f32.gmra.mrb[2].mxu0 %v22_v37  ;;  %481 = vmatpush1.bf16.msra.mxu1 %v480_v61 }
  0x49   :  { %483 = vmatprep.subr.bf16.mxu1 %v482_v0 }
  0x4c   :  { %485 = vmatpush1.bf16.msra.mxu1 %v484_v3 }
 0x117   :  { %v166_v11 = vpop.f32.mrb[0].mxu0 }
 0x118   :  { %v167_v12 = vadd.f32 %v166_v11, %v93_v9  ;;  %v168_v13 = vpop.f32.mrb[1].mxu0 }
 0x119   :  { %v169_v14 = vadd.f32 %v168_v13, %v97_v10 }
 0x11a   :  { %v181_v15 = vmul.f32 0.70710677, %v167_v12  ;;  %v177_v28 = vmul.f32 0.5, %v167_v12 }
 0x11b   :  { %v182_v16 = vmul.f32 0.70710677, %v169_v14  ;;  %v172_v17 = vpop.f32.mrb[2].mxu0  ;;  %v178_v26 = vmul.f32 0.5, %v169_v14 }
 0x11c   :  { %486 = verf.f32 %v181_v15  ;;  %v173_v18 = vadd.f32 %v172_v17, %v93_v9  ;;  %v174_v19 = vpop.f32.mrb[3].mxu0 }
 0x11d   :  { %488 = verf.f32 %v182_v16  ;;  %v175_v20 = vadd.f32 %v174_v19, %v97_v10 }
 0x11e   :  { %v183_v21 = vmul.f32 0.70710677, %v173_v18  ;;  %v179_v36 = vmul.f32 0.5, %v173_v18 }
 0x11f   :  { %v184_v22 = vmul.f32 0.70710677, %v175_v20  ;;  %v180_v34 = vmul.f32 0.5, %v175_v20 }
 0x120   :  { %490 = verf.f32 %v183_v21 }
 0x121   :  { %492 = verf.f32 %v184_v22 }
 0x126   :  { %v487_v23 = vpop.eup %486 }
 0x127   :  { %v489_v24 = vpop.eup %488  ;;  %v189_v25 = vadd.f32 1.0, %v487_v23 }
 0x128   :  { %v190_v27 = vadd.f32 1.0, %v489_v24 }
 0x129   :  { %v193_v33 = vmul.f32 %v189_v25, %v177_v28 }
 0x12a   :  { %v491_v29 = vpop.eup %490  ;;  %v194_v30 = vmul.f32 %v190_v27, %v178_v26 }
 0x12b   :  { %v493_v31 = vpop.eup %492  ;;  %v191_v32 = vadd.f32 1.0, %v491_v29 }
 0x12c   :  { %v192_v35 = vadd.f32 1.0, %v493_v31  ;;  %337 = vmatprep.mubr.f32.mxu1 %v194_v30 }
 0x12d   :  { %338 = vmatmul.mubr.f32.vlgmr.msra.gmra.mrb[0].mxu1 %v193_v33  ;;  %v195_v38 = vmul.f32 %v191_v32, %v179_v36 }
 0x12e   :  { %v196_v37 = vmul.f32 %v192_v35, %v180_v34 }
 0x130   :  { %343 = vmatprep.mubr.f32.mxu1 %v196_v37 }
 0x131   :  { %344 = vmatmul.mubr.f32.gmra.mrb[2].mxu1 %v195_v38 }
 0x200   :  { %v339_v42 = vpop.f32.mrb[0].mxu1 }
 0x201   :  { %v340_v43 = vadd.f32 %v339_v42, %v266_v40  ;;  %v341_v44 = vpop.f32.mrb[1].mxu1 }
 0x202   :  { %v342_v45 = vadd.f32 %v341_v44, %v270_v41 }
 0x203   :  { %350 = vst [vmem:[%s943_s5] sm:$0xff] %v340_v43 }
 0x204   :  { %351 = vst [vmem:[%s943_s5 + $0x8] sm:$0xff] %v342_v45  ;;  %v345_v46 = vpop.f32.mrb[2].mxu1 }
 0x205   :  { %v346_v47 = vadd.f32 %v345_v46, %v266_v40  ;;  %v347_v48 = vpop.f32.mrb[3].mxu1 }
 0x206   :  { %v348_v49 = vadd.f32 %v347_v48, %v270_v41 }
 0x207   :  { %352 = vst [vmem:[%s943_s5 + $0x10] sm:$0xff] %v346_v47 }
 0x208   :  { %353 = vst [vmem:[%s943_s5 + $0x18] sm:$0xff] %v348_v49 }

</bundles_post_ra>
